<compile_context>
chip_gen: v7x
topology: tpu7x:2x2x1
jax: 0.10.0
libtpu: 0.0.40
codegen_flags: <defaults>
</compile_context>

<pallas_src>
import functools

import jax
import jax.numpy as jnp
from jax.experimental import pallas as pl
from jax.experimental.pallas import tpu as pltpu


def _round_up(x: int, m: int) -> int:
    return (x + m - 1) // m * m


_VMEM_LIMIT = 32 * 1024 * 1024   # safe scoped-VMEM request on v5e / v6e / v7x


# --------------------------------------------------------------------------- fused kernel
def _fused_conv_kernel(w_ref, b_ref, x_ref, o_ref, *, wp2: int, padf: int):
    """Whole InvDecoder forward for one image, in flattened halo coordinates.

        o[o4, m] = bias[o4]
                 + sum_{c, kh, kw} w[kh*3+kw, o4, c] * x[c, padf + m + (kh-1)*wp2 + (kw-1)]

    x_ref : (4*Cin, Lfp)   bf16  zero-padded, row-major flattened sample planes (whole image)
    w_ref : (9, C4o_p, 4*Cin) bf16  folded (synthesis x conv x Haar-analysis) weights, tap-major
    b_ref : (C4o_p, 1)     f32   folded bias
    o_ref : (C4o_p, Mout)  f32   output samples (a/b/c/d-major channels), same flat coords
    """
    c4o, mout = o_ref.shape
    acc = jnp.zeros((c4o, mout), jnp.float32)
    # 9 taps = 9 contiguous (static) lane shifts of the VMEM slab -> 9 MXU dots.
    # MXU is underutilized (K = 4*Cin), but the stage is HBM-bound at these widths;
    # with wide channel counts assemble a K-major patch tile and do a single dot instead.
    for kh in range(3):
        for kw in range(3):
            off = padf + (kh - 1) * wp2 + (kw - 1)          # static, >= 0 by construction
            xs = x_ref[:, pl.ds(off, mout)]                  # (4*Cin, Mout), lane slice
            acc = acc + jnp.dot(w_ref[kh * 3 + kw], xs,
                                preferred_element_type=jnp.float32)
    o_ref[...] = acc + b_ref[...]


# --------------------------------------------------------------------------- weight folding
def _fold_haar_into_conv(w, b):
    """Compose Haar analysis (input side, /4) and Haar synthesis (output side, no /4)
    into the 3x3 conv weights.

    Returned weight layout: output channel = sample_m * Cout + co  (m in a,b,c,d order),
                            input  channel = sample_s * Cin  + c   (s in a,b,c,d order).
    """
    C4o, C4i = w.shape[0], w.shape[1]
    Cout, Cin = C4o // 4, C4i // 4
    # subband_k <- sample_s  (forward Haar carries the 1/4)
    A = 0.25 * jnp.array([[1, 1, 1, 1], [1, -1, 1, -1],
                          [1, 1, -1, -1], [1, -1, -1, 1]], jnp.float32)
    # sample_m <- subband_k  (reverse Haar has no 1/4)
    S = jnp.array([[1, 1, 1, 1], [1, -1, 1, -1],
                   [1, 1, -1, -1], [1, -1, -1, 1]], jnp.float32)
    w6 = w.astype(jnp.float32).reshape(4, Cout, 4, Cin, 3, 3)      # (k_out, co, k_in, c, kh, kw)
    w6 = jnp.einsum("ks,uokcij->uoscij", A, w6)                    # fold analysis: k_in -> sample s
    w6 = jnp.einsum("mu,uoscij->moscij", S, w6)                    # fold synthesis: k_out -> sample m
    wf = w6.reshape(4 * Cout, 4 * Cin, 3, 3)
    bf = (S @ b.astype(jnp.float32).reshape(4, Cout)).reshape(4 * Cout)
    return wf, bf


# --------------------------------------------------------------------------- full forward
def inv_decoder_forward(container, params, normalize=False):
    """Pallas equivalent of InvDecoder.forward(container, normalize)."""
    x = container
    B, Cin, H, W = x.shape
    if H % 2 or W % 2:
        raise ValueError(f"InvDecoder requires even spatial dims, got H={H}, W={W}")
    C4o = params["w"].shape[0]
    Cout = C4o // 4
    assert params["w"].shape[1] == 4 * Cin, "conv weight expects 4*in_channels inputs"

    H2, W2 = H // 2, W // 2
    Hp2, Wp2 = H2 + 2, W2 + 2                 # SAME-conv halo in subband space
    C4i = 4 * Cin
    C4o_p = _round_up(C4o, 8)

    # ---- weight prep (tiny): fold both Haar transforms, tap-major layout, bf16 MXU operands
    wf, bf = _fold_haar_into_conv(params["w"], params["b"])
    wk = wf.transpose(2, 3, 0, 1).reshape(9, C4o, C4i)            # (kh*3+kw, o4, c4)
    wk = jnp.pad(wk, ((0, 0), (0, C4o_p - C4o), (0, 0))).astype(jnp.bfloat16)
    bk = jnp.pad(bf, (0, C4o_p - C4o)).reshape(C4o_p, 1).astype(jnp.float32)

    # ---- input prep: ONE fused XLA pass over x
    #      (normalize) -> 2x2 sample de-interleave -> zero halo pad -> flatten -> bf16
    xn = (x - 0.5) * 2.0 if normalize else x
    xq = xn.reshape(B, Cin, H2, 2, W2, 2).transpose(0, 3, 5, 1, 2, 4)   # (B, rp, cp, Cin, H2, W2)
    xq = xq.reshape(B, C4i, H2, W2)                                      # plane-major channels
    xq = jnp.pad(xq, ((0, 0), (0, 0), (1, 1), (1, 1)))                   # zeros == SAME conv pad
    Lf = Hp2 * Wp2
    Mout = _round_up(Lf, 128)                  # lane-dense output slab (halo columns are junk)
    padf = _round_up(Wp2 + 1, 128)             # left guard so every tap slice start is >= 0
    Lfp = padf + Mout + padf
    xflat = xq.reshape(B, C4i, Lf)
    xflat = jnp.pad(xflat, ((0, 0), (0, 0), (padf, Lfp - padf - Lf))).astype(jnp.bfloat16)

    kernel = functools.partial(_fused_conv_kernel, wp2=Wp2, padf=padf)
    out_flat = pl.pallas_call(
        kernel,
        out_shape=jax.ShapeDtypeStruct((B, C4o_p, Mout), jnp.float32),
        grid=(B,),
        in_specs=[
            pl.BlockSpec((9, C4o_p, C4i), lambda bi: (0, 0, 0)),     # VMEM-resident weights
            pl.BlockSpec((C4o_p, 1), lambda bi: (0, 0)),             # VMEM-resident bias
            pl.BlockSpec((None, C4i, Lfp), lambda bi: (bi, 0, 0)),   # whole sample slab / batch
        ],
        out_specs=pl.BlockSpec((None, C4o_p, Mout), lambda bi: (bi, 0, 0)),
        compiler_params=pltpu.CompilerParams(
            dimension_semantics=("parallel",),       # batch axis splits across TCs on v7x
            vmem_limit_bytes=_VMEM_LIMIT,
        ),
        cost_estimate=pl.CostEstimate(
            flops=2 * B * 9 * C4o_p * C4i * Mout,
            transcendentals=0,
            bytes_accessed=B * (C4i * Lfp * 2 + C4o_p * Mout * 4) + 9 * C4o_p * C4i * 2,
        ),
    )(wk, bk, xflat)

    # ---- output: drop halo/padding columns, interleave the 2x2 output samples back to NCHW
    y = out_flat[:, :C4o, :Lf].reshape(B, 4, Cout, Hp2, Wp2)[:, :, :, 1:1 + H2, 1:1 + W2]
    y = (
        y.reshape(B, 2, 2, Cout, H2, W2)        # (B, rp, cp, Cout, H2, W2)
        .transpose(0, 3, 4, 1, 5, 2)            # (B, Cout, H2, rp, W2, cp)
        .reshape(B, Cout, H, W)
    )
    return y


# --------------------------------------------------------------------------- pure-JAX reference
def _reference_forward(x, w, b, normalize=False):
    """Float32 reference: Haar analysis -> lax 3x3 'SAME' conv -> Haar synthesis."""
    xx = (x - 0.5) * 2.0 if normalize else x
    B, C, H, W = xx.shape
    H2, W2 = H // 2, W // 2
    xr = xx.reshape(B, C, H2, 2, W2, 2)
    a, bb = xr[:, :, :, 0, :, 0], xr[:, :, :, 0, :, 1]
    c, d = xr[:, :, :, 1, :, 0], xr[:, :, :, 1, :, 1]
    h = jnp.stack([a + bb + c + d, a - bb + c - d, a + bb - c - d, a - bb - c + d],
                  axis=1) * 0.25
    h = h.reshape(B, 4 * C, H2, W2)
    y = jax.lax.conv_general_dilated(h, w, (1, 1), "SAME",
                                     dimension_numbers=("NCHW", "OIHW", "NCHW"))
    y = y + b.reshape(1, -1, 1, 1)
    Co = y.shape[1] // 4
    s = y.reshape(B, 4, Co, H2, W2)
    s0, s1, s2, s3 = s[:, 0], s[:, 1], s[:, 2], s[:, 3]
    top = jnp.stack([s0 + s1 + s2 + s3, s0 - s1 + s2 - s3], axis=-1)   # (B,Co,H2,W2,2)
    bot = jnp.stack([s0 + s1 - s2 - s3, s0 - s1 - s2 + s3], axis=-1)
    out = jnp.stack([top, bot], axis=-3)                               # (B,Co,H2,2,W2,2)
    return out.reshape(B, Co, H, W)


if __name__ == "__main__":
    key = jax.random.PRNGKey(0)
    kx, kw_, kb = jax.random.split(key, 3)

    B, Cin, Cout, H, W = 2, 3, 1, 16, 16
    x = jax.random.uniform(kx, (B, Cin, H, W), dtype=jnp.float32)

    # Deterministic synthetic parameters for the UNet surrogate (12 -> 4 channels).
    w = jax.random.normal(kw_, (4 * Cout, 4 * Cin, 3, 3), dtype=jnp.float32) * 0.05
    b = jax.random.normal(kb, (4 * Cout,), dtype=jnp.float32) * 0.01
    params = {"w": w, "b": b}

    fwd = jax.jit(functools.partial(inv_decoder_forward, normalize=True))
    out = jax.block_until_ready(fwd(x, params))
    assert out.shape == (B, Cout, H, W), out.shape
    assert bool(jnp.all(jnp.isfinite(out)))

    # Numerical check against the f32 reference (bf16 MXU operands -> loose tolerance).
    ref = jax.block_until_ready(_reference_forward(x, w, b, normalize=True))
    err = float(jnp.max(jnp.abs(out - ref)))
    assert err < 6e-2, err

    print("KERNEL_OK")
</pallas_src>

<mosaic_0001>
module attributes {stable_mosaic.version = 11 : i64} {
  func.func @_fused_conv_kernel(%arg0: i32, %arg1: memref<9x8x12xbf16, #tpu.memory_space<vmem>>, %arg2: memref<8x1xf32, #tpu.memory_space<vmem>>, %arg3: memref<1x12x384xbf16, #tpu.memory_space<vmem>>, %arg4: memref<1x8x128xf32, #tpu.memory_space<vmem>>) attributes {dimension_semantics = [#tpu.dimension_semantics<parallel>], iteration_bounds = array<i64: 2>, scalar_prefetch = 0 : i64, scratch_operands = 0 : i64, tpu.core_type = #tpu.core_type<tc>, window_params = [{pipeline_mode = #tpu.pipeline_mode<synchronous>, transform_indices = @transform_0, window_bounds = array<i64: 9, 8, 12>}, {pipeline_mode = #tpu.pipeline_mode<synchronous>, transform_indices = @transform_1, window_bounds = array<i64: 8, 1>}, {transform_indices = @transform_2, window_bounds = array<i64: 1, 12, 384>}, {transform_indices = @transform_3, window_bounds = array<i64: 1, 8, 128>}]} {
    %cst = arith.constant 0.000000e+00 : f32
    %0 = vector.broadcast %cst : f32 to vector<8x128xf32>
    %c0 = arith.constant 0 : index
    %c0_0 = arith.constant 0 : index
    %c117 = arith.constant 117 : index
    %1 = vector.load %arg3[%c0, %c0_0, %c117] : memref<1x12x384xbf16, #tpu.memory_space<vmem>>, vector<1x12x128xbf16>
    %2 = vector.shape_cast %1 : vector<1x12x128xbf16> to vector<12x128xbf16>
    %c0_1 = arith.constant 0 : index
    %c0_2 = arith.constant 0 : index
    %c0_3 = arith.constant 0 : index
    %3 = vector.load %arg1[%c0_1, %c0_2, %c0_3] : memref<9x8x12xbf16, #tpu.memory_space<vmem>>, vector<1x8x12xbf16>
    %4 = vector.shape_cast %3 : vector<1x8x12xbf16> to vector<8x12xbf16>
    %cst_4 = arith.constant dense<0.000000e+00> : vector<8x128xf32>
    %5 = tpu.matmul %4, %2, %cst_4 {dimension_numbers = #tpu.dot_dimension_numbers<[1], [0], [0], [1], [0, 0, 1, 1], [], []>} : vector<8x12xbf16>, vector<12x128xbf16>, vector<8x128xf32> -> vector<8x128xf32>
    %6 = arith.addf %0, %5 : vector<8x128xf32>
    %c0_5 = arith.constant 0 : index
    %c0_6 = arith.constant 0 : index
    %c118 = arith.constant 118 : index
    %7 = vector.load %arg3[%c0_5, %c0_6, %c118] : memref<1x12x384xbf16, #tpu.memory_space<vmem>>, vector<1x12x128xbf16>
    %8 = vector.shape_cast %7 : vector<1x12x128xbf16> to vector<12x128xbf16>
    %c1 = arith.constant 1 : index
    %c0_7 = arith.constant 0 : index
    %c0_8 = arith.constant 0 : index
    %9 = vector.load %arg1[%c1, %c0_7, %c0_8] : memref<9x8x12xbf16, #tpu.memory_space<vmem>>, vector<1x8x12xbf16>
    %10 = vector.shape_cast %9 : vector<1x8x12xbf16> to vector<8x12xbf16>
    %cst_9 = arith.constant dense<0.000000e+00> : vector<8x128xf32>
    %11 = tpu.matmul %10, %8, %cst_9 {dimension_numbers = #tpu.dot_dimension_numbers<[1], [0], [0], [1], [0, 0, 1, 1], [], []>} : vector<8x12xbf16>, vector<12x128xbf16>, vector<8x128xf32> -> vector<8x128xf32>
    %12 = arith.addf %6, %11 : vector<8x128xf32>
    %c0_10 = arith.constant 0 : index
    %c0_11 = arith.constant 0 : index
    %c119 = arith.constant 119 : index
    %13 = vector.load %arg3[%c0_10, %c0_11, %c119] : memref<1x12x384xbf16, #tpu.memory_space<vmem>>, vector<1x12x128xbf16>
    %14 = vector.shape_cast %13 : vector<1x12x128xbf16> to vector<12x128xbf16>
    %c2 = arith.constant 2 : index
    %c0_12 = arith.constant 0 : index
    %c0_13 = arith.constant 0 : index
    %15 = vector.load %arg1[%c2, %c0_12, %c0_13] : memref<9x8x12xbf16, #tpu.memory_space<vmem>>, vector<1x8x12xbf16>
    %16 = vector.shape_cast %15 : vector<1x8x12xbf16> to vector<8x12xbf16>
    %cst_14 = arith.constant dense<0.000000e+00> : vector<8x128xf32>
    %17 = tpu.matmul %16, %14, %cst_14 {dimension_numbers = #tpu.dot_dimension_numbers<[1], [0], [0], [1], [0, 0, 1, 1], [], []>} : vector<8x12xbf16>, vector<12x128xbf16>, vector<8x128xf32> -> vector<8x128xf32>
    %18 = arith.addf %12, %17 : vector<8x128xf32>
    %c0_15 = arith.constant 0 : index
    %c0_16 = arith.constant 0 : index
    %c127 = arith.constant 127 : index
    %19 = vector.load %arg3[%c0_15, %c0_16, %c127] : memref<1x12x384xbf16, #tpu.memory_space<vmem>>, vector<1x12x128xbf16>
    %20 = vector.shape_cast %19 : vector<1x12x128xbf16> to vector<12x128xbf16>
    %c3 = arith.constant 3 : index
    %c0_17 = arith.constant 0 : index
    %c0_18 = arith.constant 0 : index
    %21 = vector.load %arg1[%c3, %c0_17, %c0_18] : memref<9x8x12xbf16, #tpu.memory_space<vmem>>, vector<1x8x12xbf16>
    %22 = vector.shape_cast %21 : vector<1x8x12xbf16> to vector<8x12xbf16>
    %cst_19 = arith.constant dense<0.000000e+00> : vector<8x128xf32>
    %23 = tpu.matmul %22, %20, %cst_19 {dimension_numbers = #tpu.dot_dimension_numbers<[1], [0], [0], [1], [0, 0, 1, 1], [], []>} : vector<8x12xbf16>, vector<12x128xbf16>, vector<8x128xf32> -> vector<8x128xf32>
    %24 = arith.addf %18, %23 : vector<8x128xf32>
    %c0_20 = arith.constant 0 : index
    %c0_21 = arith.constant 0 : index
    %c128 = arith.constant 128 : index
    %25 = vector.load %arg3[%c0_20, %c0_21, %c128] : memref<1x12x384xbf16, #tpu.memory_space<vmem>>, vector<1x12x128xbf16>
    %26 = vector.shape_cast %25 : vector<1x12x128xbf16> to vector<12x128xbf16>
    %c4 = arith.constant 4 : index
    %c0_22 = arith.constant 0 : index
    %c0_23 = arith.constant 0 : index
    %27 = vector.load %arg1[%c4, %c0_22, %c0_23] : memref<9x8x12xbf16, #tpu.memory_space<vmem>>, vector<1x8x12xbf16>
    %28 = vector.shape_cast %27 : vector<1x8x12xbf16> to vector<8x12xbf16>
    %cst_24 = arith.constant dense<0.000000e+00> : vector<8x128xf32>
    %29 = tpu.matmul %28, %26, %cst_24 {dimension_numbers = #tpu.dot_dimension_numbers<[1], [0], [0], [1], [0, 0, 1, 1], [], []>} : vector<8x12xbf16>, vector<12x128xbf16>, vector<8x128xf32> -> vector<8x128xf32>
    %30 = arith.addf %24, %29 : vector<8x128xf32>
    %c0_25 = arith.constant 0 : index
    %c0_26 = arith.constant 0 : index
    %c129 = arith.constant 129 : index
    %31 = vector.load %arg3[%c0_25, %c0_26, %c129] : memref<1x12x384xbf16, #tpu.memory_space<vmem>>, vector<1x12x128xbf16>
    %32 = vector.shape_cast %31 : vector<1x12x128xbf16> to vector<12x128xbf16>
    %c5 = arith.constant 5 : index
    %c0_27 = arith.constant 0 : index
    %c0_28 = arith.constant 0 : index
    %33 = vector.load %arg1[%c5, %c0_27, %c0_28] : memref<9x8x12xbf16, #tpu.memory_space<vmem>>, vector<1x8x12xbf16>
    %34 = vector.shape_cast %33 : vector<1x8x12xbf16> to vector<8x12xbf16>
    %cst_29 = arith.constant dense<0.000000e+00> : vector<8x128xf32>
    %35 = tpu.matmul %34, %32, %cst_29 {dimension_numbers = #tpu.dot_dimension_numbers<[1], [0], [0], [1], [0, 0, 1, 1], [], []>} : vector<8x12xbf16>, vector<12x128xbf16>, vector<8x128xf32> -> vector<8x128xf32>
    %36 = arith.addf %30, %35 : vector<8x128xf32>
    %c0_30 = arith.constant 0 : index
    %c0_31 = arith.constant 0 : index
    %c137 = arith.constant 137 : index
    %37 = vector.load %arg3[%c0_30, %c0_31, %c137] : memref<1x12x384xbf16, #tpu.memory_space<vmem>>, vector<1x12x128xbf16>
    %38 = vector.shape_cast %37 : vector<1x12x128xbf16> to vector<12x128xbf16>
    %c6 = arith.constant 6 : index
    %c0_32 = arith.constant 0 : index
    %c0_33 = arith.constant 0 : index
    %39 = vector.load %arg1[%c6, %c0_32, %c0_33] : memref<9x8x12xbf16, #tpu.memory_space<vmem>>, vector<1x8x12xbf16>
    %40 = vector.shape_cast %39 : vector<1x8x12xbf16> to vector<8x12xbf16>
    %cst_34 = arith.constant dense<0.000000e+00> : vector<8x128xf32>
    %41 = tpu.matmul %40, %38, %cst_34 {dimension_numbers = #tpu.dot_dimension_numbers<[1], [0], [0], [1], [0, 0, 1, 1], [], []>} : vector<8x12xbf16>, vector<12x128xbf16>, vector<8x128xf32> -> vector<8x128xf32>
    %42 = arith.addf %36, %41 : vector<8x128xf32>
    %c0_35 = arith.constant 0 : index
    %c0_36 = arith.constant 0 : index
    %c138 = arith.constant 138 : index
    %43 = vector.load %arg3[%c0_35, %c0_36, %c138] : memref<1x12x384xbf16, #tpu.memory_space<vmem>>, vector<1x12x128xbf16>
    %44 = vector.shape_cast %43 : vector<1x12x128xbf16> to vector<12x128xbf16>
    %c7 = arith.constant 7 : index
    %c0_37 = arith.constant 0 : index
    %c0_38 = arith.constant 0 : index
    %45 = vector.load %arg1[%c7, %c0_37, %c0_38] : memref<9x8x12xbf16, #tpu.memory_space<vmem>>, vector<1x8x12xbf16>
    %46 = vector.shape_cast %45 : vector<1x8x12xbf16> to vector<8x12xbf16>
    %cst_39 = arith.constant dense<0.000000e+00> : vector<8x128xf32>
    %47 = tpu.matmul %46, %44, %cst_39 {dimension_numbers = #tpu.dot_dimension_numbers<[1], [0], [0], [1], [0, 0, 1, 1], [], []>} : vector<8x12xbf16>, vector<12x128xbf16>, vector<8x128xf32> -> vector<8x128xf32>
    %48 = arith.addf %42, %47 : vector<8x128xf32>
    %c0_40 = arith.constant 0 : index
    %c0_41 = arith.constant 0 : index
    %c139 = arith.constant 139 : index
    %49 = vector.load %arg3[%c0_40, %c0_41, %c139] : memref<1x12x384xbf16, #tpu.memory_space<vmem>>, vector<1x12x128xbf16>
    %50 = vector.shape_cast %49 : vector<1x12x128xbf16> to vector<12x128xbf16>
    %c8 = arith.constant 8 : index
    %c0_42 = arith.constant 0 : index
    %c0_43 = arith.constant 0 : index
    %51 = vector.load %arg1[%c8, %c0_42, %c0_43] : memref<9x8x12xbf16, #tpu.memory_space<vmem>>, vector<1x8x12xbf16>
    %52 = vector.shape_cast %51 : vector<1x8x12xbf16> to vector<8x12xbf16>
    %cst_44 = arith.constant dense<0.000000e+00> : vector<8x128xf32>
    %53 = tpu.matmul %52, %50, %cst_44 {dimension_numbers = #tpu.dot_dimension_numbers<[1], [0], [0], [1], [0, 0, 1, 1], [], []>} : vector<8x12xbf16>, vector<12x128xbf16>, vector<8x128xf32> -> vector<8x128xf32>
    %54 = arith.addf %48, %53 : vector<8x128xf32>
    %c0_45 = arith.constant 0 : index
    %c0_46 = arith.constant 0 : index
    %55 = vector.load %arg2[%c0_45, %c0_46] : memref<8x1xf32, #tpu.memory_space<vmem>>, vector<8x1xf32>
    %56 = vector.broadcast %55 : vector<8x1xf32> to vector<8x128xf32>
    %57 = arith.addf %54, %56 : vector<8x128xf32>
    %c0_47 = arith.constant 0 : index
    %c0_48 = arith.constant 0 : index
    %c0_49 = arith.constant 0 : index
    %58 = vector.load %arg4[%c0_47, %c0_48, %c0_49] : memref<1x8x128xf32, #tpu.memory_space<vmem>>, vector<1x8x128xf32>
    %59 = vector.shape_cast %58 : vector<1x8x128xf32> to vector<8x128xf32>
    %60 = vector.shape_cast %57 : vector<8x128xf32> to vector<1x8x128xf32>
    tpu.vector_store %arg4[%c0_47, %c0_48, %c0_49], %60 {strides = array<i32>} : memref<1x8x128xf32, #tpu.memory_space<vmem>>, vector<1x8x128xf32>,
    return
  }
  func.func @transform_0(%arg0: i32) -> (i32, i32, i32) {
    %c0_i32 = arith.constant 0 : i32
    %c0_i32_0 = arith.constant 0 : i32
    %c0_i32_1 = arith.constant 0 : i32
    %c0_i32_2 = arith.constant 0 : i32
    return %c0_i32, %c0_i32_0, %c0_i32_1 : i32, i32, i32
  }
  func.func @transform_1(%arg0: i32) -> (i32, i32) {
    %c0_i32 = arith.constant 0 : i32
    %c0_i32_0 = arith.constant 0 : i32
    %c0_i32_1 = arith.constant 0 : i32
    return %c0_i32, %c0_i32_0 : i32, i32
  }
  func.func @transform_2(%arg0: i32) -> (i32, i32, i32) {
    %c0_i32 = arith.constant 0 : i32
    %c0_i32_0 = arith.constant 0 : i32
    %c0_i32_1 = arith.constant 0 : i32
    return %arg0, %c0_i32, %c0_i32_0 : i32, i32, i32
  }
  func.func @transform_3(%arg0: i32) -> (i32, i32, i32) {
    %c0_i32 = arith.constant 0 : i32
    %c0_i32_0 = arith.constant 0 : i32
    %c0_i32_1 = arith.constant 0 : i32
    return %arg0, %c0_i32, %c0_i32_0 : i32, i32, i32
  }
}

</mosaic_0001>

<bundles_post_ra>
// kernel: inv_decoder_forward.1
= control target key start
LH: loop header
LB: loop body
LE: loop exit
PB: predicated region body
PF: predicated region fallthrough
CT: control target
= control target key end

     0   :  { %s916_s12 = smov 0   ;;  %s1019_s0 = inlined_call_operand.vmem [shape: bf16[9,8,12], index: 0, kind: input, shape index: {}]   ;;  %s1020_s1 = inlined_call_operand.vmem [shape: f32[8,1], index: 1, kind: input, shape index: {}]   ;;  %s1021_s2 = inlined_call_operand.vmem [shape: bf16[2,12,384], index: 2, kind: input, shape index: {}]   ;;  %s1022_s3 = inlined_call_operand.vmem [shape: f32[2,8,128], index: 3, kind: output, shape index: {}]  }
   0x1 LB: > { %s746_s13 = sadd.s32 4294967295, %s883_s12   ;;  %p750_p0 = scmp.ge.s32.totalorder %s883_s12, 1  ;;  %s883_s12 = sphi %s916_s12, %s13_s12  }
   0x2   : > { %p137_p1 = scmp.lt.s32.totalorder %s883_s12, 3 }
   0x4   : > { %p138_p2 = pnand %p750_p0, %p137_p1 }
   0x5   : > { %p160_p3 = scmp.lt.s32.totalorder (!%p138_p2), %s746_s13, 1  ;;  %v885_v0 = vmov (!%p138_p2), 0.0   ;;  %vm886_vm0 = vmmov (!%p138_p2), 0   ;;  %s887_s18 = smov (!%p138_p2), 11   ;;  %v895_v5 = vmov (!%p138_p2), 0   ;;  %v685_v6 = vld [vmem:[%s1020_s1] sm:$0xff] (!%p138_p2) }
   0x6   : > { %141 = sbr.rel (%p138_p2) target bundleno = 391 (0x187), region = 32  ;;  %795 = vmatprep.subr.bf16.mxu0 (!%p138_p2), %v885_v0  ;;  %801 = vmatprep.subr.bf16.mxu1 (!%p138_p2), %v885_v0  ;;  %s888_s19 = smov (!%p138_p2), 10   ;;  %vm187_vm1 = vcmask (!%p138_p2), 80896   ;;  %vm241_vm2 = vcmask (!%p138_p2), 89088   ;;  %vm193_vm3 = vcmask (!%p138_p2), 1045504   ;;  %vm295_vm4 = vcmask (!%p138_p2), 72704  }
   0x7   : > { %797 = vmatprep.mubr.msk.bf16.mxu0 (!%p138_p2), %vm886_vm0, %v885_v0  ;;  %803 = vmatprep.mubr.msk.bf16.mxu1 (!%p138_p2), %vm886_vm0, %v885_v0  ;;  %s889_s20 = smov (!%p138_p2), 9   ;;  %s890_s21 = smov (!%p138_p2), 1   ;;  %v753_v15 = vld [vmem:[%s1019_s0 + $0x4] sm:$0xf] (!%p138_p2)  ;;  %vm189_vm5 = vcmask (!%p138_p2), 97280   ;;  %vm350_vm6 = vcmask (!%p138_p2), 7168  }
   0x8   : > { %s891_s22 = smov (!%p138_p2), 127   ;;  %s892_s23 = smov (!%p138_p2), 119   ;;  %869 = vset.pattern.permute.xlu0 (!%p138_p2), %v895_v5  ;;  %v172_v16 = vld [vmem:[%s1019_s0] sm:$0xf] (!%p138_p2)  ;;  %vm471_vm7 = vcmask (!%p138_p2), 1039360   ;;  %vm526_vm8 = vcmask (!%p138_p2), 973824  }
   0x9   : > { %s893_s24 = smov (!%p138_p2), 118   ;;  %s894_s25 = smov (!%p138_p2), 117   ;;  %v758_v26 = vld [vmem:[%s1019_s0 + $0x8] sm:$0xf] (!%p138_p2)  ;;  %v760_v27 = vld [vmem:[%s1019_s0 + $0xc] sm:$0xf] (!%p138_p2) }
   0xa   : > { %vm581_vm9 = vcmask (!%p138_p2), 965632   ;;  %v762_v36 = vld [vmem:[%s1019_s0 + $0x10] sm:$0xf] (!%p138_p2)  ;;  %v765_v37 = vld [vmem:[%s1019_s0 + $0x14] sm:$0xf] (!%p138_p2)  ;;  %vm636_vm10 = vcmask (!%p138_p2), 957440  }
   0xb   : > { %v769_v46 = vld [vmem:[%s1019_s0 + $0x18] sm:$0xf] (!%p138_p2)  ;;  %v771_v47 = vld [vmem:[%s1019_s0 + $0x1c] sm:$0xf] (!%p138_p2)  ;;  %v773_v49 = vld [vmem:[%s1019_s0 + $0x20] sm:$0xf] (!%p138_p2) }
   0xd   : > { %s1024_s13 = smov (!%p160_p3, %s746_s13), 1 }
   0xe   : > { %s849_s14 = smul.u32 24, %s1024_s13 }
  0x10   : > { %s936_s17 = scalar_lea.vmem %s1021_s2, %s849_s14 }
  0x11   : > { %v870_v1 = vld [vmem:[%s936_s17] ss:$12 sps:$4 sm:$0x3f]   ;;  %v872_v2 = vld [vmem:[%s936_s17 + $0x4] ss:$12 sps:$4 sm:$0x3f]  }
  0x12   : > { %237 = vrot.lane.b32.xlu1 %v870_v1, %s887_s18  ;;  %183 = vrot.lane.b32.xlu0 %v870_v1, %s888_s19  ;;  %v873_v3 = vld [vmem:[%s936_s17 + $0x8] ss:$12 sps:$4 sm:$0x3f]   ;;  %v875_v4 = vld [vmem:[%s936_s17 + $0x4] ss:$12 sps:$4 sm:$0x3f]  }
  0x13   : > { %v876_v23 = vld [vmem:[%s936_s17 + $0x4] ss:$12 sps:$4 sm:$0x3f]  }
  0x14   : > { %v412_v28 = vsel %vm193_vm3, %v876_v23, 0 }
  0x16   : > { %239 = vrot.lane.b32.xlu1 %v872_v2, %s887_s18  ;;  %185 = vrot.lane.b32.xlu0 %v872_v2, %s888_s19 }
  0x1a   : > { %293 = vrot.lane.b32.xlu1 %v872_v2, %s889_s20  ;;  %291 = vrot.lane.b32.xlu0 %v870_v1, %s889_s20 }
  0x1e   : > { %348 = vrot.lane.b32.xlu1 %v872_v2, %s890_s21  ;;  %346 = vrot.lane.b32.xlu0 %v870_v1, %s890_s21  ;;  %s752_s21 = sshll.u32 %s1024_s13, 3 }
  0x22   : > { %469 = vrot.lane.b32.xlu1 %v873_v3, %s891_s22  ;;  %467 = vrot.lane.b32.xlu0 %v875_v4, %s891_s22 }
  0x26   : > { %524 = vrot.lane.b32.xlu1 %v873_v3, %s892_s23  ;;  %522 = vrot.lane.b32.xlu0 %v875_v4, %s892_s23 }
  0x2a   : > { %579 = vrot.lane.b32.xlu1 %v873_v3, %s893_s24  ;;  %577 = vrot.lane.b32.xlu0 %v875_v4, %s893_s24  ;;  %s168_s24 = scalar_lea.vmem %s1022_s3, %s752_s21 }
  0x2e   : > { %634 = vrot.lane.b32.xlu1 %v873_v3, %s894_s25  ;;  %632 = vrot.lane.b32.xlu0 %v875_v4, %s894_s25 }
  0x32   : > { %688 = vperm.xlu0 %869, %v685_v6  }
  0x84   : > { %v238_v7 = vpop.permute.xlu1 %237  ;;  %v184_v8 = vpop.permute.xlu0 %183 }
  0x88   : > { %v240_v9 = vpop.permute.xlu1 %239  ;;  %v186_v10 = vpop.permute.xlu0 %185 }
  0x89   : > { %v188_v11 = vsel %vm187_vm1, %v184_v8, %v186_v10  ;;  %v242_v12 = vsel %vm241_vm2, %v238_v7, %v240_v9 }
  0x8a   : > { %v195_v13 = vsel %vm193_vm3, %v188_v11, 0  ;;  %v247_v14 = vsel %vm193_vm3, %v242_v12, 0 }
  0x8b   : > { %796 = vmatpush3.bf16.msra.mxu0 %v195_v13  ;;  %802 = vmatpush3.bf16.msra.mxu1 %v247_v14 }
  0x8c   : > { %v294_v17 = vpop.permute.xlu1 %293  ;;  %v292_v18 = vpop.permute.xlu0 %291  ;;  %807 = vmatprep.subr.bf16.mxu0 %v885_v0  ;;  %813 = vmatprep.subr.bf16.mxu1 %v885_v0 }
  0x8d   : > { %v296_v19 = vsel %vm295_vm4, %v292_v18, %v294_v17 }
  0x8e   : > { %v301_v20 = vsel %vm193_vm3, %v296_v19, 0  ;;  %798 = vmatmul.mubr.msk.bf16.vlgmr.msra.gmra.mrb[0].mxu0 %vm189_vm5, %v753_v15  ;;  %804 = vmatmul.mubr.msk.bf16.vlgmr.msra.gmra.mrb[0].mxu1 %vm189_vm5, %v172_v16 }
  0x8f   : > { %808 = vmatpush3.bf16.msra.mxu0 %v301_v20  ;;  %809 = vmatprep.mubr.msk.bf16.mxu0 %vm886_vm0, %v885_v0 }
  0x90   : > { %v349_v21 = vpop.permute.xlu1 %348  ;;  %v347_v22 = vpop.permute.xlu0 %346  ;;  %819 = vmatprep.subr.bf16.mxu0 %v885_v0  ;;  %815 = vmatprep.mubr.msk.bf16.mxu1 %vm886_vm0, %v885_v0 }
  0x91   : > { %v351_v24 = vsel %vm350_vm6, %v347_v22, %v349_v21 }
  0x92   : > { %v356_v25 = vsel %vm193_vm3, %v351_v24, 0 }
  0x93   : > { %814 = vmatpush3.bf16.msra.mxu1 %v356_v25 }
  0x94   : > { %v470_v29 = vpop.permute.xlu1 %469  ;;  %v468_v30 = vpop.permute.xlu0 %467  ;;  %825 = vmatprep.subr.bf16.mxu1 %v885_v0 }
  0x95   : > { %v472_v31 = vsel %vm471_vm7, %v468_v30, %v470_v29 }
  0x96   : > { %810 = vmatmul.mubr.msk.bf16.vlgmr.msra.gmra.mrb[4].mxu0 %vm189_vm5, %v758_v26  ;;  %816 = vmatmul.mubr.msk.bf16.vlgmr.msra.gmra.mrb[4].mxu1 %vm189_vm5, %v760_v27  ;;  %v477_v32 = vsel %vm193_vm3, %v472_v31, 0 }
  0x97   : > { %820 = vmatpush3.bf16.msra.mxu0 %v412_v28  ;;  %826 = vmatpush3.bf16.msra.mxu1 %v477_v32 }
  0x98   : > { %v525_v33 = vpop.permute.xlu1 %524  ;;  %v523_v34 = vpop.permute.xlu0 %522  ;;  %821 = vmatprep.mubr.msk.bf16.mxu0 %vm886_vm0, %v885_v0  ;;  %831 = vmatprep.subr.bf16.mxu0 %v885_v0 }
  0x99   : > { %v527_v35 = vsel %vm526_vm8, %v523_v34, %v525_v33  ;;  %827 = vmatprep.mubr.msk.bf16.mxu1 %vm886_vm0, %v885_v0  ;;  %837 = vmatprep.subr.bf16.mxu1 %v885_v0 }
  0x9a   : > { %v532_v38 = vsel %vm193_vm3, %v527_v35, 0 }
  0x9c   : > { %v580_v39 = vpop.permute.xlu1 %579  ;;  %v578_v40 = vpop.permute.xlu0 %577 }
  0x9d   : > { %v582_v41 = vsel %vm581_vm9, %v578_v40, %v580_v39 }
  0x9e   : > { %822 = vmatmul.mubr.msk.bf16.vlgmr.msra.gmra.mrb[8].mxu0 %vm189_vm5, %v762_v36  ;;  %828 = vmatmul.mubr.msk.bf16.vlgmr.msra.gmra.mrb[8].mxu1 %vm189_vm5, %v765_v37  ;;  %v587_v42 = vsel %vm193_vm3, %v582_v41, 0 }
  0x9f   : > { %832 = vmatpush3.bf16.msra.mxu0 %v532_v38  ;;  %838 = vmatpush3.bf16.msra.mxu1 %v587_v42 }
  0xa0   : > { %v635_v43 = vpop.permute.xlu1 %634  ;;  %v633_v44 = vpop.permute.xlu0 %632  ;;  %833 = vmatprep.mubr.msk.bf16.mxu0 %vm886_vm0, %v885_v0  ;;  %843 = vmatprep.subr.bf16.mxu0 %v885_v0 }
  0xa1   : > { %v637_v45 = vsel %vm636_vm10, %v633_v44, %v635_v43  ;;  %839 = vmatprep.mubr.msk.bf16.mxu1 %vm886_vm0, %v885_v0 }
  0xa2   : > { %v642_v48 = vsel %vm193_vm3, %v637_v45, 0 }
  0xa6   : > { %834 = vmatmul.mubr.msk.bf16.vlgmr.msra.gmra.mrb[12].mxu0 %vm189_vm5, %v769_v46  ;;  %840 = vmatmul.mubr.msk.bf16.vlgmr.msra.gmra.mrb[12].mxu1 %vm189_vm5, %v771_v47 }
  0xa7   : > { %844 = vmatpush3.bf16.msra.mxu0 %v642_v48  ;;  %845 = vmatprep.mubr.msk.bf16.mxu0 %vm886_vm0, %v885_v0 }
  0xae   : > { %846 = vmatmul.mubr.msk.bf16.vlgmr.msra.gmra.mrb[16].mxu0 %vm189_vm5, %v773_v49 }
  0xb1   : > { %v689_v26 = vpop.permute.xlu0 %688 }
 0x161   : > { %v231_v50 = vpop.f32.mrb[0].mxu0  ;;  %v283_v51 = vpop.f32.mrb[0].mxu1 }
 0x162   : > { %v799_v52 = vpop.f32.mrb[1].mxu0  ;;  %v284_v53 = vadd.f32 %v283_v51, %v231_v50  ;;  %v805_v54 = vpop.f32.mrb[1].mxu1 }
 0x163   : > { %v234_v55 = vpop.f32.mrb[2].mxu0  ;;  %v286_v56 = vpop.f32.mrb[2].mxu1 }
 0x164   : > { %v800_v57 = vpop.f32.mrb[3].mxu0  ;;  %v806_v58 = vpop.f32.mrb[3].mxu1 }
 0x169   : > { %v337_v59 = vpop.f32.mrb[4].mxu0  ;;  %v392_v60 = vpop.f32.mrb[4].mxu1 }
 0x16a   : > { %v343_v61 = vadd.f32 %v337_v59, %v284_v53  ;;  %v811_v62 = vpop.f32.mrb[5].mxu0  ;;  %v817_v63 = vpop.f32.mrb[5].mxu1 }
 0x16b   : > { %v340_v0 = vpop.f32.mrb[6].mxu0  ;;  %v395_v1 = vpop.f32.mrb[6].mxu1 }
 0x16c   : > { %v398_v2 = vadd.f32 %v392_v60, %v343_v61  ;;  %v812_v3 = vpop.f32.mrb[7].mxu0  ;;  %v818_v4 = vpop.f32.mrb[7].mxu1 }
 0x171   : > { %v448_v5 = vpop.f32.mrb[8].mxu0  ;;  %v513_v6 = vpop.f32.mrb[8].mxu1 }
 0x172   : > { %v454_v7 = vadd.f32 %v448_v5, %v398_v2  ;;  %v823_v8 = vpop.f32.mrb[9].mxu0  ;;  %v829_v9 = vpop.f32.mrb[9].mxu1 }
 0x173   : > { %v451_v10 = vpop.f32.mrb[10].mxu0  ;;  %v516_v11 = vpop.f32.mrb[10].mxu1 }
 0x174   : > { %v519_v12 = vadd.f32 %v513_v6, %v454_v7  ;;  %v824_v13 = vpop.f32.mrb[11].mxu0  ;;  %v830_v14 = vpop.f32.mrb[11].mxu1 }
 0x179   : > { %v568_v15 = vpop.f32.mrb[12].mxu0  ;;  %v623_v16 = vpop.f32.mrb[12].mxu1 }
 0x17a   : > { %v574_v17 = vadd.f32 %v568_v15, %v519_v12  ;;  %v835_v18 = vpop.f32.mrb[13].mxu0  ;;  %v841_v19 = vpop.f32.mrb[13].mxu1 }
 0x17b   : > { %v571_v20 = vpop.f32.mrb[14].mxu0  ;;  %v626_v21 = vpop.f32.mrb[14].mxu1 }
 0x17c   : > { %v629_v22 = vadd.f32 %v623_v16, %v574_v17  ;;  %v836_v23 = vpop.f32.mrb[15].mxu0  ;;  %v842_v24 = vpop.f32.mrb[15].mxu1 }
 0x181   : > { %v678_v25 = vpop.f32.mrb[16].mxu0 }
 0x182   : > { %v684_v27 = vadd.f32 %v678_v25, %v629_v22  ;;  %v847_v28 = vpop.f32.mrb[17].mxu0 }
 0x183   : > { %v681_v29 = vpop.f32.mrb[18].mxu0 }
 0x184   : > { %v691_v30 = vadd.f32 %v689_v26, %v684_v27  ;;  %v848_v31 = vpop.f32.mrb[19].mxu0 }
 0x186   : > { %692 = vst [vmem:[%s168_s24] sm:$0xff] %v691_v30 }
 0x187 PF: > { %s13_s12 = sadd.s32 1, %s883_s12  }
 0x188   : > { %p10_p4 = scmp.ge.s32.totalorder %s13_s12, 4  }
 0x18a   :  { %12 = sbr.rel (!%p10_p4) target bundleno = 1 (0x1), region = 70 }

</bundles_post_ra>
